<compile_context>
chip_gen: v6e
topology: v6e:2x2x1
jax: 0.10.0
libtpu: 0.0.40
codegen_flags: <defaults>
</compile_context>

<pallas_src>
import jax
import jax.numpy as jnp
from jax.experimental import pallas as pl
from jax.experimental.pallas import tpu as pltpu


def _round_up(x: int, m: int) -> int:
    return ((x + m - 1) // m) * m


def _logreg_kernel(x_ref, w_ref, b_ref, o_ref):
    """One batch tile of sigmoid(x @ w.T + b).

    x_ref: (TB, F) f32 VMEM -- tile of input rows (double-buffered by Pallas;
                               last tile may be ragged: overhang rows hold
                               undefined data whose outputs are discarded)
    w_ref: (1, F)  f32 VMEM -- full weight row, grid-invariant (stays resident)
    b_ref: (1, 1)  f32 SMEM -- bias scalar
    o_ref: (1, TB) f32 VMEM -- lane-dense output tile (batch rows along lanes)
    """
    x = x_ref[...]                                   # (TB, F)
    w = w_ref[...]                                   # (1, F)

    # Contract over the feature axis of BOTH operands (q @ k^T style): no
    # in-kernel transpose, and the (1, TB) result is lane-dense for the store.
    logits = jnp.einsum("of,nf->on", w, x,
                        preferred_element_type=jnp.float32)   # (1, TB)
    logits = logits + b_ref[0, 0]                    # SMEM scalar broadcast

    # Exact sigmoid via tanh: sigmoid(z) = 0.5 * tanh(z/2) + 0.5.
    # Transcendental runs on the EUP slot; epilogue is mul+add on the VPU.
    probs = 0.5 * jnp.tanh(0.5 * logits) + 0.5       # (1, TB)
    o_ref[...] = probs.astype(o_ref.dtype)


def logistic_regression_forward(x, weight, bias, *, block_rows: int = 32768):
    """sigmoid(x @ weight.T + bias).  x: (B, F), weight: (1, F), bias: (1,) -> (B, 1)."""
    x = jnp.asarray(x, jnp.float32)
    B, F = x.shape
    weight = jnp.asarray(weight, jnp.float32).reshape(1, F)
    bias = jnp.asarray(bias, jnp.float32).reshape(1, 1)

    # Batch tile: multiple of 128 (lane-dense output block), clamped so tiny
    # batches do not over-allocate.  No padding of x: the last block may be
    # ragged and its overhang only feeds output rows sliced off below.
    tb = min(_round_up(block_rows, 128), _round_up(B, 128))
    # Batches large enough to split should produce >= 2 tiles so the
    # "parallel" grid axis can be sharded across the 2 TensorCores on v7x.
    if B > 256 and pl.cdiv(B, tb) < 2:
        tb = _round_up(pl.cdiv(B, 2), 128)
    num_tiles = pl.cdiv(B, tb)
    b_round = num_tiles * tb

    out = pl.pallas_call(
        _logreg_kernel,
        out_shape=jax.ShapeDtypeStruct((1, b_round), jnp.float32),
        grid_spec=pl.GridSpec(
            grid=(num_tiles,),
            in_specs=[
                # x: one (TB, F) tile per grid step -> pipelined, double-buffered
                # DMA.  F=31 equals the full dim, TB is a multiple of 128, so the
                # (8,128) block constraint is satisfied even for a ragged last tile.
                pl.BlockSpec((tb, F), lambda i: (i, 0)),
                # weight: same block every step -> stays VMEM-resident.
                pl.BlockSpec((1, F), lambda i: (0, 0)),
                # bias: single scalar in SMEM (no 8x128 VMEM padding).
                pl.BlockSpec(memory_space=pltpu.MemorySpace.SMEM),
            ],
            # Lane-dense output block: batch rows along the 128-lane axis.
            out_specs=pl.BlockSpec((1, tb), lambda i: (0, i)),
        ),
        compiler_params=pltpu.CompilerParams(
            # Batch tiles are independent -> shard across TensorCores on v7x;
            # free on single-core v5e/v6e.
            dimension_semantics=("parallel",),
            # x double-buffer at tb=32768 is 2 * tb * 128 lanes * 4 B = 32 MiB
            # (F=31 lane-padded to 128) + ~2 MiB of output buffers; 48 MiB is
            # within physical VMEM on all of v5e/v6e (128 MiB) and v7x (64 MiB)
            # while exceeding the default scoped limit that would otherwise
            # reject this tile size.
            vmem_limit_bytes=48 * 1024 * 1024,
        ),
        # Advisory cost so XLA overlaps surrounding ops with this
        # memory-bound custom call.
        cost_estimate=pl.CostEstimate(
            flops=2 * B * F,
            transcendentals=B,
            bytes_accessed=4 * (B * F + F + 1 + b_round),
        ),
    )(x, weight, bias)

    return out.reshape(b_round, 1)[:B]


if __name__ == "__main__":
    input_dim = 31   # num_features, as in the reference script
    batch = 8

    key = jax.random.PRNGKey(0)
    kx, kw, kb, kx2 = jax.random.split(key, 4)
    x = jax.random.normal(kx, (batch, input_dim), dtype=jnp.float32)

    # --- Test 1: the module exactly as constructed (weight/bias zeroed) ------
    weight0 = jnp.zeros((1, input_dim), dtype=jnp.float32)
    bias0 = jnp.zeros((1,), dtype=jnp.float32)
    out0 = jax.block_until_ready(logistic_regression_forward(x, weight0, bias0))
    assert out0.shape == (batch, 1)
    assert jnp.allclose(out0, 0.5, atol=1e-6)        # sigmoid(0) == 0.5

    # --- Test 2: non-zero parameters vs. a plain-JAX reference ---------------
    weight = 0.2 * jax.random.normal(kw, (1, input_dim), dtype=jnp.float32)
    bias = 0.1 * jax.random.normal(kb, (1,), dtype=jnp.float32)
    out = jax.block_until_ready(logistic_regression_forward(x, weight, bias))
    ref = jax.nn.sigmoid(x @ weight.T + bias)
    assert out.shape == ref.shape
    assert jnp.allclose(out, ref, atol=5e-3), float(jnp.max(jnp.abs(out - ref)))

    # --- Test 3: multi-tile grid + ragged last block (no-pad path) -----------
    x2 = jax.random.normal(kx2, (300, input_dim), dtype=jnp.float32)
    out2 = jax.block_until_ready(
        logistic_regression_forward(x2, weight, bias, block_rows=128))
    ref2 = jax.nn.sigmoid(x2 @ weight.T + bias)
    assert out2.shape == (300, 1)
    assert jnp.allclose(out2, ref2, atol=5e-3), float(jnp.max(jnp.abs(out2 - ref2)))

    # --- Test 4: default tile with the >=2-tiles heuristic (B=300 -> tb=256) -
    out3 = jax.block_until_ready(logistic_regression_forward(x2, weight, bias))
    assert out3.shape == (300, 1)
    assert jnp.allclose(out3, ref2, atol=5e-3), float(jnp.max(jnp.abs(out3 - ref2)))

    print("KERNEL_OK")
</pallas_src>

<mosaic_0001>
module attributes {stable_mosaic.version = 11 : i64} {
  func.func @_logreg_kernel(%arg0: i32, %arg1: memref<128x31xf32, #tpu.memory_space<vmem>>, %arg2: memref<1x31xf32, #tpu.memory_space<vmem>>, %arg3: memref<1x1xf32, #tpu.memory_space<smem>>, %arg4: memref<1x128xf32, #tpu.memory_space<vmem>>) attributes {dimension_semantics = [#tpu.dimension_semantics<parallel>], iteration_bounds = array<i64: 1>, scalar_prefetch = 0 : i64, scratch_operands = 0 : i64, tpu.core_type = #tpu.core_type<tc>, window_params = [{transform_indices = @transform_0, window_bounds = array<i64: 128, 31>}, {pipeline_mode = #tpu.pipeline_mode<synchronous>, transform_indices = @transform_1, window_bounds = array<i64: 1, 31>}, {transform_indices = @transform_2, window_bounds = array<i64: 1, 1>}, {transform_indices = @transform_3, window_bounds = array<i64: 1, 128>}]} {
    %c0 = arith.constant 0 : index
    %c0_0 = arith.constant 0 : index
    %0 = vector.load %arg1[%c0, %c0_0] : memref<128x31xf32, #tpu.memory_space<vmem>>, vector<128x31xf32>
    %c0_1 = arith.constant 0 : index
    %c0_2 = arith.constant 0 : index
    %1 = vector.load %arg2[%c0_1, %c0_2] : memref<1x31xf32, #tpu.memory_space<vmem>>, vector<1x31xf32>
    "tpu.trace_start"() <{level = 10 : i32, message = "of,nf->on"}> : () -> ()
    %cst = arith.constant dense<0.000000e+00> : vector<1x128xf32>
    %2 = tpu.matmul %1, %0, %cst {dimension_numbers = #tpu.dot_dimension_numbers<[1], [1], [0], [0], [0, 0, 1, 0], [], []>} : vector<1x31xf32>, vector<128x31xf32>, vector<1x128xf32> -> vector<1x128xf32>
    "tpu.trace_stop"() : () -> ()
    %c0_3 = arith.constant 0 : index
    %c0_4 = arith.constant 0 : index
    %3 = memref.load %arg3[%c0_3, %c0_4] : memref<1x1xf32, #tpu.memory_space<smem>>
    %4 = vector.broadcast %3 : f32 to vector<1x128xf32>
    %5 = arith.addf %2, %4 : vector<1x128xf32>
    %cst_5 = arith.constant 5.000000e-01 : f32
    %6 = vector.broadcast %cst_5 : f32 to vector<1x128xf32>
    %7 = arith.mulf %6, %5 : vector<1x128xf32>
    %8 = math.tanh %7 : vector<1x128xf32>
    %cst_6 = arith.constant 5.000000e-01 : f32
    %9 = vector.broadcast %cst_6 : f32 to vector<1x128xf32>
    %10 = arith.mulf %9, %8 : vector<1x128xf32>
    %cst_7 = arith.constant 5.000000e-01 : f32
    %11 = vector.broadcast %cst_7 : f32 to vector<1x128xf32>
    %12 = arith.addf %10, %11 : vector<1x128xf32>
    %c0_8 = arith.constant 0 : index
    %c0_9 = arith.constant 0 : index
    %13 = vector.load %arg4[%c0_8, %c0_9] : memref<1x128xf32, #tpu.memory_space<vmem>>, vector<1x128xf32>
    tpu.vector_store %arg4[%c0_8, %c0_9], %12 {strides = array<i32>} : memref<1x128xf32, #tpu.memory_space<vmem>>, vector<1x128xf32>,
    return
  }
  func.func @transform_0(%arg0: i32) -> (i32, i32) {
    %c0_i32 = arith.constant 0 : i32
    %c0_i32_0 = arith.constant 0 : i32
    return %arg0, %c0_i32 : i32, i32
  }
  func.func @transform_1(%arg0: i32) -> (i32, i32) {
    %c0_i32 = arith.constant 0 : i32
    %c0_i32_0 = arith.constant 0 : i32
    %c0_i32_1 = arith.constant 0 : i32
    return %c0_i32, %c0_i32_0 : i32, i32
  }
  func.func @transform_2(%arg0: i32) -> (i32, i32) {
    %c0_i32 = arith.constant 0 : i32
    %c0_i32_0 = arith.constant 0 : i32
    %c0_i32_1 = arith.constant 0 : i32
    return %c0_i32, %c0_i32_0 : i32, i32
  }
  func.func @transform_3(%arg0: i32) -> (i32, i32) {
    %c0_i32 = arith.constant 0 : i32
    %c0_i32_0 = arith.constant 0 : i32
    return %c0_i32, %arg0 : i32, i32
  }
}

</mosaic_0001>

<bundles_post_ra>
// kernel: tpu_custom_call.1
= control target key start
LH: loop header
LB: loop body
LE: loop exit
PB: predicated region body
PF: predicated region fallthrough
CT: control target
= control target key end

     0   :  { %9 = vsyncpa [#allocation4], 0  ;;  %s367_s0 = inlined_call_operand.hbm [shape: f32[8,31], index: 0, kind: input, shape index: {}]   ;;  %s368_s1 = inlined_call_operand.vmem [shape: f32[1,31], index: 1, kind: input, shape index: {}]   ;;  %s369_s2 = inlined_call_operand.<no memory space> [shape: f32[1,1], index: 2, kind: input, shape index: {}]   ;;  %s370_s3 = inlined_call_operand.hbm [shape: f32[1,128], index: 3, kind: output, shape index: {}]  }
   0x1   :  { %10 = vsyncpa [#allocation5], 0 }
   0x2   :  { %15 = vsyncadd [#allocation4], 1920  ;;  %s312_s12 = smov [#allocation3]  }
   0x3   :  { %s16_s13 = sshll.u32 %s312_s12, 4  ;;  %s17_s13 = int_to_ptr.vmem [resolvable:$true] %s16_s13 }
   0x4   :  { %s276_s14 = scalar_lea.vmem %s17_s13, 128  ;;  %s280_s15 = scalar_lea.vmem %s17_s13, 2048 }
   0x5   :  { %p277_p0 = scmp.ne.s32.totalorder %s17_s13, %s276_s14  ;;  %p281_p1 = scmp.lt.s32.totalorder %s17_s13, %s17_s13 }
   0x6   :  { %p282_p2 = scmp.lt.s32.totalorder %s280_s15, %s276_s14 }
   0x8   :  { %p283_p3 = por %p282_p2, %p281_p1 }
   0xa   :  { %p284_p4 = pnand %p283_p3, %p277_p0 }
   0xc   :  { %287 = shalt.err (!%p284_p4)
}
   0xd   :  { %s313_s16 = smov 128   ;;  %s314_s17 = smov 8  }
   0xe   :  { %22 = dma.hbm_to_vmem [thread:$0]  %s367_s0, 128, %s17_s13, [#allocation4], %s313_s16, %s313_s16, %s314_s17  }
   0xf   :  { %308 = dma.done.wait [#allocation4], 2048  }
  0x10   :  { %309 = vsyncadd [#allocation4], 4294965248  ;;  %v315_v0 = vmov 0.0   ;;  %vm316_vm0 = vmmov 0   ;;  %vm49_vm1 = vcmask 252928   ;;  %v45_v1 = vld [vmem:[#allocation3 + $0x78] sm:$0xff]  ;;  %v48_v18 = vstv %s369_s2 }
  0x11   :  { %225 = vmatprep.subr.mxu0 %v315_v0  ;;  %257 = vmatprep.mubr.msk.f32.mxu0 %vm316_vm0, %v315_v0  ;;  %v44_v2 = vld [vmem:[#allocation3 + $0x70] sm:$0xff]  ;;  %v43_v3 = vld [vmem:[#allocation3 + $0x68] sm:$0xff]  ;;  %v42_v4 = vld [vmem:[#allocation3 + $0x60] sm:$0xff]  ;;  %s317_s23 = smov [#allocation6]  }
  0x12   :  { %226 = vmatpush3.xpose.msk.msra.mxu0 %vm49_vm1, %v45_v1  ;;  %v41_v5 = vld [vmem:[#allocation3 + $0x58] sm:$0xff]  ;;  %v40_v6 = vld [vmem:[#allocation3 + $0x50] sm:$0xff]  ;;  %v39_v7 = vld [vmem:[#allocation3 + $0x48] sm:$0xff]  ;;  %s182_s24 = sshll.u32 %s317_s23, 4  ;;  %s183_s24 = int_to_ptr.vmem [resolvable:$true] %s182_s24 }
  0x13   :  { %227 = vmatprep.subr.mxu0 %v315_v0  ;;  %v38_v8 = vld [vmem:[#allocation3 + $0x40] sm:$0xff]  ;;  %v37_v9 = vld [vmem:[#allocation3 + $0x38] sm:$0xff]  ;;  %v36_v10 = vld [vmem:[#allocation3 + $0x30] sm:$0xff]  ;;  %s288_s25 = scalar_lea.vmem %s183_s24, 16  ;;  %p293_p6 = scmp.lt.s32.totalorder %s183_s24, %s183_s24 }
  0x14   :  { %v35_v11 = vld [vmem:[#allocation3 + $0x28] sm:$0xff]  ;;  %v34_v12 = vld [vmem:[#allocation3 + $0x20] sm:$0xff]  ;;  %v33_v13 = vld [vmem:[#allocation3 + $0x18] sm:$0xff]  ;;  %p289_p5 = scmp.ne.s32.totalorder %s183_s24, %s288_s25 }
  0x15   :  { %v32_v14 = vld [vmem:[#allocation3 + $0x10] sm:$0xff]  ;;  %v31_v15 = vld [vmem:[#allocation3 + $0x8] sm:$0xff]  ;;  %v30_v16 = vld [vmem:[#allocation3] sm:$0xff] }
  0x16   :  { %228 = vmatpush3.xpose.msk.msra.mxu0 %vm49_vm1, %v44_v2  ;;  %v46_v17 = vld [vmem:[%s368_s1] sm:$0x1]  ;;  %s292_s1 = scalar_lea.vmem %s183_s24, 32 }
  0x17   :  { %229 = vmatprep.subr.mxu0 %v315_v0  ;;  %p294_p7 = scmp.lt.s32.totalorder %s292_s1, %s288_s25 }
  0x19   :  { %p295_p8 = por %p294_p7, %p293_p6 }
  0x1a   :  { %230 = vmatpush3.xpose.msk.msra.mxu0 %vm49_vm1, %v43_v3 }
  0x1b   :  { %231 = vmatprep.subr.mxu0 %v315_v0  ;;  %p296_p9 = pnand %p295_p8, %p289_p5 }
  0x1e   :  { %232 = vmatpush3.xpose.msk.msra.mxu0 %vm49_vm1, %v42_v4 }
  0x1f   :  { %233 = vmatprep.subr.mxu0 %v315_v0 }
  0x22   :  { %234 = vmatpush3.xpose.msk.msra.mxu0 %vm49_vm1, %v41_v5 }
  0x23   :  { %235 = vmatprep.subr.mxu0 %v315_v0 }
  0x26   :  { %236 = vmatpush3.xpose.msk.msra.mxu0 %vm49_vm1, %v40_v6 }
  0x27   :  { %237 = vmatprep.subr.mxu0 %v315_v0 }
  0x2a   :  { %238 = vmatpush3.xpose.msk.msra.mxu0 %vm49_vm1, %v39_v7 }
  0x2b   :  { %239 = vmatprep.subr.mxu0 %v315_v0 }
  0x2e   :  { %240 = vmatpush3.xpose.msk.msra.mxu0 %vm49_vm1, %v38_v8 }
  0x2f   :  { %241 = vmatprep.subr.mxu0 %v315_v0 }
  0x32   :  { %242 = vmatpush3.xpose.msk.msra.mxu0 %vm49_vm1, %v37_v9 }
  0x33   :  { %243 = vmatprep.subr.mxu0 %v315_v0 }
  0x36   :  { %244 = vmatpush3.xpose.msk.msra.mxu0 %vm49_vm1, %v36_v10 }
  0x37   :  { %245 = vmatprep.subr.mxu0 %v315_v0 }
  0x3a   :  { %246 = vmatpush3.xpose.msk.msra.mxu0 %vm49_vm1, %v35_v11 }
  0x3b   :  { %247 = vmatprep.subr.mxu0 %v315_v0 }
  0x3e   :  { %248 = vmatpush3.xpose.msk.msra.mxu0 %vm49_vm1, %v34_v12 }
  0x3f   :  { %249 = vmatprep.subr.mxu0 %v315_v0 }
  0x42   :  { %250 = vmatpush3.xpose.msk.msra.mxu0 %vm49_vm1, %v33_v13 }
  0x43   :  { %251 = vmatprep.subr.mxu0 %v315_v0 }
  0x46   :  { %252 = vmatpush3.xpose.msk.msra.mxu0 %vm49_vm1, %v32_v14 }
  0x47   :  { %253 = vmatprep.subr.mxu0 %v315_v0 }
  0x4a   :  { %254 = vmatpush3.xpose.msk.msra.mxu0 %vm49_vm1, %v31_v15 }
  0x4b   :  { %255 = vmatprep.subr.mxu0 %v315_v0 }
  0x4e   :  { %256 = vmatpush3.xpose.msk.msra.mxu0 %vm49_vm1, %v30_v16 }
  0x51   :  { %258 = vmatmul.mubr.msk.f32.vlgmr.msra.gmra.mxu0 %vm49_vm1, %v46_v17 }
 0x111   :  { %v167_v19 = vpop.f32.mrf.mxu0 }
 0x112   :  { %v168_v20 = vadd.f32 %v167_v19, %v48_v18 }
 0x113   :  { %v259_v21 = vpop.f32.mrf.mxu0 }
 0x114   :  { %v171_v22 = vmul.f32 0.5, %v168_v20 }
 0x116   :  { %266 = vtanh.f32 %v171_v22 }
 0x123   :  { %v267_v23 = vpop.eup %266 }
 0x124   :  { %v173_v24 = vmul.f32 0.5, %v267_v23 }
 0x126   :  { %v174_v25 = vadd.f32 0.5, %v173_v24 }
 0x128   :  { %175 = vst [vmem:[#allocation6] sm:$0x1] %v174_v25 }
 0x129   :  { %299 = shalt.err (!%p296_p9)
}
 0x12a   :  { %185 = dma.vmem_to_hbm [thread:$0]  %s183_s24, 16, %s370_s3, [#allocation5]  }
 0x12b   :  { %310 = dma.done.wait [#allocation5], 16  }
 0x12c   :  { %311 = vsyncadd [#allocation5], 4294967280 }
 0x12d   :  { %189 = vsyncpa [#allocation4], 1 }
 0x12e   :  { %190 = vsyncpa [#allocation5], 1 }

</bundles_post_ra>
